<compile_context>
chip_gen: v6e
topology: v6e:2x2x1
jax: 0.10.0
libtpu: 0.0.40
codegen_flags: <defaults>
</compile_context>

<pallas_src>
import functools

import jax
import jax.numpy as jnp
from jax import lax
from jax.experimental import pallas as pl
from jax.experimental.pallas import tpu as pltpu

_NEG = -1e30   # large-negative mask value (avoids inf - inf edge cases)
_EPS = 1e-12


def _am_softmax_kernel(labels_ref, x_ref, w_ref, loss_ref, acc_ref,
                       m_sc, l_sc, t_sc,
                       *, margin, scale, b_actual, c_actual, tb, tc,
                       has_class_pad, normalize_w):
    i = pl.program_id(0)           # batch-tile index ("parallel")
    k = pl.program_id(1)           # class-tile index (online-softmax axis)

    @pl.when(k == 0)
    def _():
        m_sc[...] = jnp.full(m_sc.shape, _NEG, dtype=jnp.float32)
        l_sc[...] = jnp.zeros(l_sc.shape, dtype=jnp.float32)
        t_sc[...] = jnp.zeros(t_sc.shape, dtype=jnp.float32)

    labels = labels_ref[...]                                   # (TB, 1) int32

    if normalize_w:
        # n_b == 1: each w tile is read exactly once -> normalize it here
        # instead of a separate wrapper pass over the whole weight matrix.
        w = w_ref[...].astype(jnp.float32)                     # (K, TC)
        inv_wn = lax.rsqrt(jnp.maximum(jnp.sum(w * w, axis=0, keepdims=True), _EPS))
        w_tile = (w * inv_wn).astype(jnp.bfloat16)
    else:
        w_tile = w_ref[...]                                    # already normalized bf16

    # x is pre-normalized bf16; MXU matmul with f32 accumulation.
    cos = jnp.dot(x_ref[...], w_tile,
                  preferred_element_type=jnp.float32)          # (TB, TC) f32

    col = k * tc + lax.broadcasted_iota(jnp.int32, cos.shape, 1)   # global class id
    is_target = col == labels                                      # one-hot mask

    # value = s * (cos - m * one_hot); fused margin subtraction at label column.
    value = scale * cos
    value = jnp.where(is_target, value - scale * margin, value)
    if has_class_pad:
        value = jnp.where(col < c_actual, value, _NEG)

    # Target logit (exactly one class tile contributes per valid row).
    t_sc[...] += jnp.sum(jnp.where(is_target, value, 0.0), axis=1, keepdims=True)

    # Online softmax across class tiles.
    tile_max = jnp.max(value, axis=1, keepdims=True)           # (TB,1)
    m_old = m_sc[...]
    m_new = jnp.maximum(m_old, tile_max)
    l_sc[...] = jnp.exp(m_old - m_new) * l_sc[...] + \
        jnp.sum(jnp.exp(value - m_new), axis=1, keepdims=True)
    m_sc[...] = m_new

    @pl.when(k == pl.num_programs(1) - 1)
    def _():
        row = i * tb + lax.broadcasted_iota(jnp.int32, (tb, 1), 0)
        row_valid = row < b_actual
        lse = m_sc[...] + jnp.log(l_sc[...])                   # (TB,1)
        nll = jnp.where(row_valid, lse - t_sc[...], 0.0)       # -log p(target)
        # Target wins top-1 iff its (margin-adjusted) logit equals the running max.
        correct = jnp.where(row_valid & (t_sc[...] >= m_sc[...]), 1.0, 0.0)
        loss_ref[...] = jnp.broadcast_to(jnp.sum(nll).reshape(1, 1, 1),
                                         loss_ref.shape)
        acc_ref[...] = jnp.broadcast_to(jnp.sum(correct).reshape(1, 1, 1),
                                        acc_ref.shape)


def _round_up(a, b):
    return (a + b - 1) // b * b


def _is_v7x():
    try:
        return "v7" in jax.devices()[0].device_kind.lower()
    except Exception:
        return False


def cosine_margin_loss(x, labels, w, margin=0.35, scale=64.0):
    """Forward pass of the cosine-margin (AM-Softmax) loss.

    x: (B, nOut) float32 embeddings
    labels: (B,) int32 class ids
    w: (nOut, nClasses) float32 weight
    returns: (mean cross-entropy loss, top-1 accuracy in percent)
    """
    B, n_out = x.shape
    n_classes = w.shape[1]
    labels = labels.astype(jnp.int32)

    # --- tile sizing ---------------------------------------------------------
    if B >= 512:
        tb = 256                                    # w-stream bound sweet spot (v5e/v6e)
    elif B >= 32:
        tb = _round_up(pl.cdiv(B, 2), 16)           # >=2 batch tiles -> both v7x cores busy
    else:
        tb = _round_up(B, 16)
    b_pad = _round_up(B, tb)
    n_b = b_pad // tb

    k_pad = _round_up(n_out, 128)                   # matmul K dim -> full MXU feed

    c_pad = _round_up(n_classes, 128)
    if _is_v7x() and c_pad % 1024 == 0:
        tc = 1024
    elif c_pad % 512 == 0:
        tc = 512
    elif c_pad % 256 == 0:
        tc = 256
    else:
        tc = 128
    n_c = c_pad // tc
    has_class_pad = c_pad != n_classes

    # --- input preparation (one fused pass each) ----------------------------
    # Row-normalize x once (hoisted out of the class loop), cast bf16, pad.
    x32 = x.astype(jnp.float32)
    inv_xn = lax.rsqrt(jnp.maximum(jnp.sum(x32 * x32, axis=1, keepdims=True), _EPS))
    x_in = jnp.pad((x32 * inv_xn).astype(jnp.bfloat16),
                   ((0, b_pad - B), (0, k_pad - n_out)))

    labels_p = jnp.pad(labels, (0, b_pad - B), constant_values=-1)
    labels2d = labels_p.reshape(b_pad, 1)

    normalize_w_in_kernel = (n_b == 1)
    if normalize_w_in_kernel:
        # Each w tile is visited exactly once -> skip the wrapper HBM pass.
        w_in = jnp.pad(w.astype(jnp.float32),
                       ((0, k_pad - n_out), (0, c_pad - n_classes)))
    else:
        inv_wn = lax.rsqrt(jnp.maximum(jnp.sum(w * w, axis=0, keepdims=True), _EPS))
        w_in = jnp.pad((w * inv_wn).astype(jnp.bfloat16),
                       ((0, k_pad - n_out), (0, c_pad - n_classes)))

    kernel = functools.partial(
        _am_softmax_kernel,
        margin=float(margin), scale=float(scale),   # Python floats: no captured tracers
        b_actual=B, c_actual=n_classes, tb=tb, tc=tc,
        has_class_pad=has_class_pad, normalize_w=normalize_w_in_kernel)

    loss_parts, acc_parts = pl.pallas_call(
        kernel,
        out_shape=(
            jax.ShapeDtypeStruct((n_b, 1, 128), jnp.float32),
            jax.ShapeDtypeStruct((n_b, 1, 128), jnp.float32),
        ),
        grid_spec=pltpu.PrefetchScalarGridSpec(
            num_scalar_prefetch=0,
            grid=(n_b, n_c),
            in_specs=[
                pl.BlockSpec((tb, 1), lambda i, k: (i, 0)),       # labels (resident per B-tile)
                pl.BlockSpec((tb, k_pad), lambda i, k: (i, 0)),   # pre-normalized bf16 x tile
                pl.BlockSpec((k_pad, tc), lambda i, k: (0, k)),   # w tile (double-buffered)
            ],
            out_specs=(
                pl.BlockSpec((1, 1, 128), lambda i, k: (i, 0, 0)),
                pl.BlockSpec((1, 1, 128), lambda i, k: (i, 0, 0)),
            ),
            scratch_shapes=[
                pltpu.VMEM((tb, 1), jnp.float32),   # running max
                pltpu.VMEM((tb, 1), jnp.float32),   # running sum-exp
                pltpu.VMEM((tb, 1), jnp.float32),   # target logit
            ],
        ),
        compiler_params=pltpu.CompilerParams(
            dimension_semantics=("parallel", "arbitrary"),
            vmem_limit_bytes=32 * 1024 * 1024,
        ),
    )(labels2d, x_in, w_in)

    # Tiny final reduction over B-tiles (plain XLA).
    loss = jnp.sum(loss_parts[:, 0, 0]) / B
    prec1 = jnp.sum(acc_parts[:, 0, 0]) / B * 100.0
    return loss, prec1


def init_weight(key, n_out, n_classes):
    # torch.nn.init.xavier_normal_(w, gain=1): std = sqrt(2 / (fan_in + fan_out))
    std = (2.0 / (n_out + n_classes)) ** 0.5
    return jax.random.normal(key, (n_out, n_classes), dtype=jnp.float32) * std


if __name__ == "__main__":
    key = jax.random.PRNGKey(0)
    k_x, k_w, k_lbl = jax.random.split(key, 3)

    B, nOut, nClasses = 8, 32, 16
    x = jax.random.normal(k_x, (B, nOut), dtype=jnp.float32)
    w = init_weight(k_w, nOut, nClasses)
    labels = jax.random.randint(k_lbl, (B,), 0, nClasses, dtype=jnp.int32)

    loss, prec1 = cosine_margin_loss(x, labels, w, margin=0.35, scale=64.0)
    jax.block_until_ready((loss, prec1))
    print("KERNEL_OK")
</pallas_src>

<mosaic_0001>
module attributes {stable_mosaic.version = 11 : i64} {
  func.func @_am_softmax_kernel(%arg0: i32, %arg1: i32, %arg2: memref<16x1xi32, #tpu.memory_space<vmem>>, %arg3: memref<16x128xbf16, #tpu.memory_space<vmem>>, %arg4: memref<128x128xf32, #tpu.memory_space<vmem>>, %arg5: memref<1x1x128xf32, #tpu.memory_space<vmem>>, %arg6: memref<1x1x128xf32, #tpu.memory_space<vmem>>, %arg7: memref<16x1xf32, #tpu.memory_space<vmem>>, %arg8: memref<16x1xf32, #tpu.memory_space<vmem>>, %arg9: memref<16x1xf32, #tpu.memory_space<vmem>>) attributes {dimension_semantics = [#tpu.dimension_semantics<parallel>, #tpu.dimension_semantics<arbitrary>], iteration_bounds = array<i64: 1, 1>, scalar_prefetch = 0 : i64, scratch_operands = 3 : i64, tpu.core_type = #tpu.core_type<tc>, window_params = [{transform_indices = @transform_0, window_bounds = array<i64: 16, 1>}, {transform_indices = @transform_1, window_bounds = array<i64: 16, 128>}, {transform_indices = @transform_2, window_bounds = array<i64: 128, 128>}, {transform_indices = @transform_3, window_bounds = array<i64: 1, 1, 128>}, {transform_indices = @transform_4, window_bounds = array<i64: 1, 1, 128>}]} {
    %c0_i32 = arith.constant 0 : i32
    %0 = arith.cmpi eq, %arg1, %c0_i32 : i32
    %1 = arith.extui %0 : i1 to i32
    %c0_i32_0 = arith.constant 0 : i32
    %2 = arith.cmpi ne, %1, %c0_i32_0 : i32
    scf.if %2 {
      %cst_29 = arith.constant -1.000000e+30 : f32
      %57 = vector.broadcast %cst_29 : f32 to vector<16x1xf32>
      %c0_30 = arith.constant 0 : index
      %c0_31 = arith.constant 0 : index
      %58 = vector.load %arg7[%c0_30, %c0_31] : memref<16x1xf32, #tpu.memory_space<vmem>>, vector<16x1xf32>
      tpu.vector_store %arg7[%c0_30, %c0_31], %57 {strides = array<i32>} : memref<16x1xf32, #tpu.memory_space<vmem>>, vector<16x1xf32>,
      %cst_32 = arith.constant 0.000000e+00 : f32
      %59 = vector.broadcast %cst_32 : f32 to vector<16x1xf32>
      %c0_33 = arith.constant 0 : index
      %c0_34 = arith.constant 0 : index
      %60 = vector.load %arg8[%c0_33, %c0_34] : memref<16x1xf32, #tpu.memory_space<vmem>>, vector<16x1xf32>
      tpu.vector_store %arg8[%c0_33, %c0_34], %59 {strides = array<i32>} : memref<16x1xf32, #tpu.memory_space<vmem>>, vector<16x1xf32>,
      %cst_35 = arith.constant 0.000000e+00 : f32
      %61 = vector.broadcast %cst_35 : f32 to vector<16x1xf32>
      %c0_36 = arith.constant 0 : index
      %c0_37 = arith.constant 0 : index
      %62 = vector.load %arg9[%c0_36, %c0_37] : memref<16x1xf32, #tpu.memory_space<vmem>>, vector<16x1xf32>
      tpu.vector_store %arg9[%c0_36, %c0_37], %61 {strides = array<i32>} : memref<16x1xf32, #tpu.memory_space<vmem>>, vector<16x1xf32>,
    } else {
    }
    %c0 = arith.constant 0 : index
    %c0_1 = arith.constant 0 : index
    %3 = vector.load %arg2[%c0, %c0_1] : memref<16x1xi32, #tpu.memory_space<vmem>>, vector<16x1xi32>
    %c0_2 = arith.constant 0 : index
    %c0_3 = arith.constant 0 : index
    %4 = vector.load %arg4[%c0_2, %c0_3] : memref<128x128xf32, #tpu.memory_space<vmem>>, vector<128x128xf32>
    %5 = arith.mulf %4, %4 : vector<128x128xf32>
    %cst = arith.constant dense<0.000000e+00> : vector<128xf32>
    %6 = vector.multi_reduction <add>, %5, %cst [0] : vector<128x128xf32> to vector<128xf32>
    %7 = vector.shape_cast %6 : vector<128xf32> to vector<1x128xf32>
    %cst_4 = arith.constant 9.99999996E-13 : f32
    %8 = vector.broadcast %cst_4 : f32 to vector<1x128xf32>
    %9 = arith.maximumf %7, %8 : vector<1x128xf32>
    %10 = math.rsqrt %9 : vector<1x128xf32>
    %11 = vector.broadcast %10 : vector<1x128xf32> to vector<128x128xf32>
    %12 = arith.mulf %4, %11 : vector<128x128xf32>
    %13 = arith.truncf %12 : vector<128x128xf32> to vector<128x128xbf16>
    %c0_5 = arith.constant 0 : index
    %c0_6 = arith.constant 0 : index
    %14 = vector.load %arg3[%c0_5, %c0_6] : memref<16x128xbf16, #tpu.memory_space<vmem>>, vector<16x128xbf16>
    %cst_7 = arith.constant dense<0.000000e+00> : vector<16x128xf32>
    %15 = tpu.matmul %14, %13, %cst_7 {dimension_numbers = #tpu.dot_dimension_numbers<[1], [0], [0], [1], [0, 0, 1, 1], [], []>} : vector<16x128xbf16>, vector<128x128xbf16>, vector<16x128xf32> -> vector<16x128xf32>
    %c128_i32 = arith.constant 128 : i32
    %16 = arith.muli %arg1, %c128_i32 : i32
    %17 = tpu.iota {dimensions = array<i32: 1>} : vector<16x128xi32>
    %18 = vector.broadcast %16 : i32 to vector<16x128xi32>
    %19 = arith.addi %18, %17 : vector<16x128xi32>
    %20 = vector.broadcast %3 : vector<16x1xi32> to vector<16x128xi32>
    %21 = arith.cmpi eq, %19, %20 : vector<16x128xi32>
    %cst_8 = arith.constant 6.400000e+01 : f32
    %22 = vector.broadcast %cst_8 : f32 to vector<16x128xf32>
    %23 = arith.mulf %22, %15 : vector<16x128xf32>
    %cst_9 = arith.constant 2.240000e+01 : f32
    %24 = vector.broadcast %cst_9 : f32 to vector<16x128xf32>
    %25 = arith.subf %23, %24 : vector<16x128xf32>
    %26 = arith.select %21, %25, %23 : vector<16x128xi1>, vector<16x128xf32>
    %c16_i32 = arith.constant 16 : i32
    %27 = vector.broadcast %c16_i32 : i32 to vector<16x128xi32>
    %28 = arith.cmpi slt, %19, %27 : vector<16x128xi32>
    %cst_10 = arith.constant -1.000000e+30 : f32
    %29 = vector.broadcast %cst_10 : f32 to vector<16x128xf32>
    %30 = arith.select %28, %26, %29 : vector<16x128xi1>, vector<16x128xf32>
    %c0_11 = arith.constant 0 : index
    %c0_12 = arith.constant 0 : index
    %31 = vector.load %arg9[%c0_11, %c0_12] : memref<16x1xf32, #tpu.memory_space<vmem>>, vector<16x1xf32>
    %cst_13 = arith.constant 0.000000e+00 : f32
    %32 = vector.broadcast %cst_13 : f32 to vector<16x128xf32>
    %33 = arith.select %21, %30, %32 : vector<16x128xi1>, vector<16x128xf32>
    %cst_14 = arith.constant dense<0.000000e+00> : vector<16xf32>
    %34 = vector.multi_reduction <add>, %33, %cst_14 [1] : vector<16x128xf32> to vector<16xf32>
    %35 = vector.shape_cast %34 : vector<16xf32> to vector<16x1xf32>
    %36 = arith.addf %31, %35 : vector<16x1xf32>
    %c0_15 = arith.constant 0 : index
    %c0_16 = arith.constant 0 : index
    %37 = vector.load %arg9[%c0_15, %c0_16] : memref<16x1xf32, #tpu.memory_space<vmem>>, vector<16x1xf32>
    tpu.vector_store %arg9[%c0_15, %c0_16], %36 {strides = array<i32>} : memref<16x1xf32, #tpu.memory_space<vmem>>, vector<16x1xf32>,
    %cst_17 = arith.constant dense<0xFF800000> : vector<16xf32>
    %38 = vector.multi_reduction <maximumf>, %30, %cst_17 [1] : vector<16x128xf32> to vector<16xf32>
    %39 = vector.shape_cast %38 : vector<16xf32> to vector<16x1xf32>
    %c0_18 = arith.constant 0 : index
    %c0_19 = arith.constant 0 : index
    %40 = vector.load %arg7[%c0_18, %c0_19] : memref<16x1xf32, #tpu.memory_space<vmem>>, vector<16x1xf32>
    %41 = arith.maximumf %40, %39 : vector<16x1xf32>
    %42 = arith.subf %40, %41 : vector<16x1xf32>
    %43 = math.exp %42 : vector<16x1xf32>
    %c0_20 = arith.constant 0 : index
    %c0_21 = arith.constant 0 : index
    %44 = vector.load %arg8[%c0_20, %c0_21] : memref<16x1xf32, #tpu.memory_space<vmem>>, vector<16x1xf32>
    %45 = arith.mulf %43, %44 : vector<16x1xf32>
    %46 = vector.broadcast %41 : vector<16x1xf32> to vector<16x128xf32>
    %47 = arith.subf %30, %46 : vector<16x128xf32>
    %48 = math.exp %47 : vector<16x128xf32>
    %cst_22 = arith.constant dense<0.000000e+00> : vector<16xf32>
    %49 = vector.multi_reduction <add>, %48, %cst_22 [1] : vector<16x128xf32> to vector<16xf32>
    %50 = vector.shape_cast %49 : vector<16xf32> to vector<16x1xf32>
    %51 = arith.addf %45, %50 : vector<16x1xf32>
    %c0_23 = arith.constant 0 : index
    %c0_24 = arith.constant 0 : index
    %52 = vector.load %arg8[%c0_23, %c0_24] : memref<16x1xf32, #tpu.memory_space<vmem>>, vector<16x1xf32>
    tpu.vector_store %arg8[%c0_23, %c0_24], %51 {strides = array<i32>} : memref<16x1xf32, #tpu.memory_space<vmem>>, vector<16x1xf32>,
    %c0_25 = arith.constant 0 : index
    %c0_26 = arith.constant 0 : index
    %53 = vector.load %arg7[%c0_25, %c0_26] : memref<16x1xf32, #tpu.memory_space<vmem>>, vector<16x1xf32>
    tpu.vector_store %arg7[%c0_25, %c0_26], %41 {strides = array<i32>} : memref<16x1xf32, #tpu.memory_space<vmem>>, vector<16x1xf32>,
    %c0_i32_27 = arith.constant 0 : i32
    %54 = arith.cmpi eq, %arg1, %c0_i32_27 : i32
    %55 = arith.extui %54 : i1 to i32
    %c0_i32_28 = arith.constant 0 : i32
    %56 = arith.cmpi ne, %55, %c0_i32_28 : i32
    scf.if %56 {
      %c16_i32_29 = arith.constant 16 : i32
      %57 = arith.muli %arg0, %c16_i32_29 : i32
      %58 = tpu.iota {dimensions = array<i32: 0>} : vector<16x1xi32>
      %59 = vector.broadcast %57 : i32 to vector<16x1xi32>
      %60 = arith.addi %59, %58 : vector<16x1xi32>
      %c8_i32 = arith.constant 8 : i32
      %61 = vector.broadcast %c8_i32 : i32 to vector<16x1xi32>
      %62 = arith.cmpi slt, %60, %61 : vector<16x1xi32>
      %c0_30 = arith.constant 0 : index
      %c0_31 = arith.constant 0 : index
      %63 = vector.load %arg7[%c0_30, %c0_31] : memref<16x1xf32, #tpu.memory_space<vmem>>, vector<16x1xf32>
      %c0_32 = arith.constant 0 : index
      %c0_33 = arith.constant 0 : index
      %64 = vector.load %arg8[%c0_32, %c0_33] : memref<16x1xf32, #tpu.memory_space<vmem>>, vector<16x1xf32>
      %65 = math.log %64 : vector<16x1xf32>
      %66 = arith.addf %63, %65 : vector<16x1xf32>
      %c0_34 = arith.constant 0 : index
      %c0_35 = arith.constant 0 : index
      %67 = vector.load %arg9[%c0_34, %c0_35] : memref<16x1xf32, #tpu.memory_space<vmem>>, vector<16x1xf32>
      %68 = arith.subf %66, %67 : vector<16x1xf32>
      %cst_36 = arith.constant 0.000000e+00 : f32
      %69 = vector.broadcast %cst_36 : f32 to vector<16x1xf32>
      %70 = arith.select %62, %68, %69 : vector<16x1xi1>, vector<16x1xf32>
      %c0_37 = arith.constant 0 : index
      %c0_38 = arith.constant 0 : index
      %71 = vector.load %arg9[%c0_37, %c0_38] : memref<16x1xf32, #tpu.memory_space<vmem>>, vector<16x1xf32>
      %c0_39 = arith.constant 0 : index
      %c0_40 = arith.constant 0 : index
      %72 = vector.load %arg7[%c0_39, %c0_40] : memref<16x1xf32, #tpu.memory_space<vmem>>, vector<16x1xf32>
      %73 = arith.cmpf oge, %71, %72 : vector<16x1xf32>
      %74 = arith.andi %62, %73 : vector<16x1xi1>
      %cst_41 = arith.constant 1.000000e+00 : f32
      %cst_42 = arith.constant 0.000000e+00 : f32
      %75 = vector.broadcast %cst_41 : f32 to vector<16x1xf32>
      %76 = vector.broadcast %cst_42 : f32 to vector<16x1xf32>
      %77 = arith.select %74, %75, %76 : vector<16x1xi1>, vector<16x1xf32>
      %78 = vector.shape_cast %70 : vector<16x1xf32> to vector<1x16x1xf32>
      %cst_43 = arith.constant dense<0.000000e+00> : vector<1xf32>
      %79 = vector.multi_reduction <add>, %78, %cst_43 [1, 2] : vector<1x16x1xf32> to vector<1xf32>
      %80 = vector.shape_cast %79 : vector<1xf32> to vector<1x1x1xf32>
      %81 = vector.extract %80[0, 0, 0] : f32 from vector<1x1x1xf32>
      %82 = vector.broadcast %81 : f32 to vector<1x1x1xf32>
      %83 = vector.shape_cast %82 : vector<1x1x1xf32> to vector<1x1x1xf32>
      %84 = vector.broadcast %83 : vector<1x1x1xf32> to vector<1x1x128xf32>
      %c0_44 = arith.constant 0 : index
      %c0_45 = arith.constant 0 : index
      %c0_46 = arith.constant 0 : index
      %85 = vector.load %arg5[%c0_44, %c0_45, %c0_46] : memref<1x1x128xf32, #tpu.memory_space<vmem>>, vector<1x1x128xf32>
      tpu.vector_store %arg5[%c0_44, %c0_45, %c0_46], %84 {strides = array<i32>} : memref<1x1x128xf32, #tpu.memory_space<vmem>>, vector<1x1x128xf32>,
      %86 = vector.shape_cast %77 : vector<16x1xf32> to vector<1x16x1xf32>
      %cst_47 = arith.constant dense<0.000000e+00> : vector<1xf32>
      %87 = vector.multi_reduction <add>, %86, %cst_47 [1, 2] : vector<1x16x1xf32> to vector<1xf32>
      %88 = vector.shape_cast %87 : vector<1xf32> to vector<1x1x1xf32>
      %89 = vector.extract %88[0, 0, 0] : f32 from vector<1x1x1xf32>
      %90 = vector.broadcast %89 : f32 to vector<1x1x1xf32>
      %91 = vector.shape_cast %90 : vector<1x1x1xf32> to vector<1x1x1xf32>
      %92 = vector.broadcast %91 : vector<1x1x1xf32> to vector<1x1x128xf32>
      %c0_48 = arith.constant 0 : index
      %c0_49 = arith.constant 0 : index
      %c0_50 = arith.constant 0 : index
      %93 = vector.load %arg6[%c0_48, %c0_49, %c0_50] : memref<1x1x128xf32, #tpu.memory_space<vmem>>, vector<1x1x128xf32>
      tpu.vector_store %arg6[%c0_48, %c0_49, %c0_50], %92 {strides = array<i32>} : memref<1x1x128xf32, #tpu.memory_space<vmem>>, vector<1x1x128xf32>,
    } else {
    }
    return
  }
  func.func @transform_0(%arg0: i32, %arg1: i32) -> (i32, i32) {
    %c0_i32 = arith.constant 0 : i32
    %c0_i32_0 = arith.constant 0 : i32
    return %arg0, %c0_i32 : i32, i32
  }
  func.func @transform_1(%arg0: i32, %arg1: i32) -> (i32, i32) {
    %c0_i32 = arith.constant 0 : i32
    %c0_i32_0 = arith.constant 0 : i32
    return %arg0, %c0_i32 : i32, i32
  }
  func.func @transform_2(%arg0: i32, %arg1: i32) -> (i32, i32) {
    %c0_i32 = arith.constant 0 : i32
    %c0_i32_0 = arith.constant 0 : i32
    return %c0_i32, %arg1 : i32, i32
  }
  func.func @transform_3(%arg0: i32, %arg1: i32) -> (i32, i32, i32) {
    %c0_i32 = arith.constant 0 : i32
    %c0_i32_0 = arith.constant 0 : i32
    %c0_i32_1 = arith.constant 0 : i32
    return %arg0, %c0_i32, %c0_i32_0 : i32, i32, i32
  }
  func.func @transform_4(%arg0: i32, %arg1: i32) -> (i32, i32, i32) {
    %c0_i32 = arith.constant 0 : i32
    %c0_i32_0 = arith.constant 0 : i32
    %c0_i32_1 = arith.constant 0 : i32
    return %arg0, %c0_i32, %c0_i32_0 : i32, i32, i32
  }
}

</mosaic_0001>

<bundles_post_ra>
// kernel: tpu_custom_call.1
= control target key start
LH: loop header
LB: loop body
LE: loop exit
PB: predicated region body
PF: predicated region fallthrough
CT: control target
= control target key end

     0   :  { %10 = vsyncpa [#allocation6], 0  ;;  %s599_s0 = inlined_call_operand.vmem [shape: s32[16,1], index: 0, kind: input, shape index: {}]   ;;  %s600_s1 = inlined_call_operand.vmem [shape: bf16[16,128], index: 1, kind: input, shape index: {}]   ;;  %s601_s2 = inlined_call_operand.hbm [shape: f32[128,128], index: 2, kind: input, shape index: {}]   ;;  %s602_s3 = inlined_call_operand.hbm [shape: f32[1,1,128], index: 3, kind: output, shape index: {0}]   ;;  %s603_s4 = inlined_call_operand.hbm [shape: f32[1,1,128], index: 4, kind: output, shape index: {1}]  }
   0x1   :  { %11 = vsyncpa [#allocation7], 0 }
   0x2   :  { %12 = vsyncpa [#allocation10], 0  ;;  %s470_s15 = smov [#allocation5]  }
   0x3   :  { %s22_s16 = sshll.u32 %s470_s15, 4  ;;  %s23_s16 = int_to_ptr.vmem [resolvable:$true] %s22_s16 }
   0x4   :  { %s412_s17 = scalar_lea.vmem %s23_s16, 2048  ;;  %p417_p1 = scmp.lt.s32.totalorder %s23_s16, %s23_s16 }
   0x5   :  { %p413_p0 = scmp.ne.s32.totalorder %s23_s16, %s412_s17  ;;  %p418_p2 = scmp.lt.s32.totalorder %s412_s17, %s412_s17 }
   0x7   :  { %p419_p3 = por %p418_p2, %p417_p1 }
   0x9   :  { %p420_p4 = pnand %p419_p3, %p413_p0 }
   0xb   :  { %423 = shalt.err (!%p420_p4)
}
   0xc   :  { %s471_s18 = smov 128   ;;  %s472_s19 = smov 8  }
   0xd   :  { %28 = dma.hbm_to_vmem [thread:$0]  %s601_s2, 2048, %s23_s16, [#allocation6], %s471_s18, %s471_s18, %s472_s19  }
   0xe   :  { %464 = dma.done.wait [#allocation6], 2048  }
   0xf   :  { %465 = vsyncadd [#allocation6], 4294965248  ;;  %v473_v0 = vmov 0.0   ;;  %vm474_vm0 = vmmov 0   ;;  %v475_v1 = vmov 0   ;;  %v509_v2 = vld [vmem:[#allocation5] sm:$0xff] }
  0x10   :  { %356 = vmatprep.subr.bf16.mxu0 %v473_v0  ;;  %372 = vmatprep.mubr.msk.bf16.mxu0 %vm474_vm0, %v473_v0  ;;  %v511_v3 = vld [vmem:[#allocation5 + $0x8] sm:$0xff]  ;;  %v513_v4 = vld [vmem:[#allocation5 + $0x10] sm:$0xff]  ;;  %v515_v5 = vld [vmem:[#allocation5 + $0x18] sm:$0xff]  ;;  %v62_v6 = vmul.f32 %v509_v2, %v509_v2  ;;  %vm37_vm1 = vcmask 7168   ;;  %s478_s28 = smov [#allocation9]  }
  0x11   :  { %389 = vset.pattern.permute.xlu0 %v475_v1  ;;  %390 = vset.pattern.permute.xlu1 %v475_v1  ;;  %v63_v7 = vmul.f32 %v511_v3, %v511_v3  ;;  %v64_v8 = vmul.f32 %v513_v4, %v513_v4  ;;  %v50_v9 = vld [vmem:[#allocation5 + $0x20] sm:$0xff]  ;;  %v65_v10 = vmul.f32 %v515_v5, %v515_v5  ;;  %v51_v12 = vld [vmem:[#allocation5 + $0x28] sm:$0xff]  ;;  %v52_v15 = vld [vmem:[#allocation5 + $0x30] sm:$0xff]  ;;  %s331_s29 = sshll.u32 %s478_s28, 4  ;;  %s332_s29 = int_to_ptr.vmem [resolvable:$true] %s331_s29 }
  0x12   :  { %v66_v13 = vmul.f32 %v50_v9, %v50_v9  ;;  %v44_v16 = vld [vmem:[%s599_s0] sm:$0xff]  ;;  %v67_v17 = vmul.f32 %v51_v12, %v51_v12  ;;  %v53_v19 = vld [vmem:[#allocation5 + $0x38] sm:$0xff]  ;;  %v68_v20 = vmul.f32 %v52_v15, %v52_v15  ;;  %v54_v22 = vld [vmem:[#allocation5 + $0x40] sm:$0xff]  ;;  %40 = vst.msk [vmem:[#allocation3] sm:$0xff] %vm37_vm1, %v473_v0 }
  0x13   :  { %v78_v11 = vadd.f32 %v63_v7, %v62_v6  ;;  %180 = vperm.xlu0 %389, %v44_v16   ;;  %v69_v23 = vmul.f32 %v53_v19, %v53_v19  ;;  %v55_v25 = vld [vmem:[#allocation5 + $0x48] sm:$0xff]  ;;  %v70_v26 = vmul.f32 %v54_v22, %v54_v22  ;;  %v56_v28 = vld [vmem:[#allocation5 + $0x50] sm:$0xff]  ;;  %v57_v31 = vld [vmem:[#allocation5 + $0x58] sm:$0xff]  ;;  %41 = vst.msk [vmem:[#allocation3 + $0x8] sm:$0xff] %vm37_vm1, %v473_v0 }
  0x14   :  { %v71_v29 = vmul.f32 %v55_v25, %v55_v25  ;;  %v72_v32 = vmul.f32 %v56_v28, %v56_v28  ;;  %v58_v34 = vld [vmem:[#allocation5 + $0x60] sm:$0xff]  ;;  %v73_v35 = vmul.f32 %v57_v31, %v57_v31  ;;  %v59_v37 = vld [vmem:[#allocation5 + $0x68] sm:$0xff]  ;;  %v60_v40 = vld [vmem:[#allocation5 + $0x70] sm:$0xff]  ;;  %42 = vst.msk [vmem:[#allocation4] sm:$0xff] %vm37_vm1, %v473_v0 }
  0x15   :  { %v79_v14 = vadd.f32 %v78_v11, %v64_v8  ;;  %v74_v38 = vmul.f32 %v58_v34, %v58_v34  ;;  %v75_v41 = vmul.f32 %v59_v37, %v59_v37  ;;  %v61_v43 = vld [vmem:[#allocation5 + $0x78] sm:$0xff]  ;;  %v76_v44 = vmul.f32 %v60_v40, %v60_v40  ;;  %43 = vst.msk [vmem:[#allocation4 + $0x8] sm:$0xff] %vm37_vm1, %v473_v0 }
  0x16   :  { %v77_v46 = vmul.f32 %v61_v43, %v61_v43 }
  0x17   :  { %v80_v18 = vadd.f32 %v79_v14, %v65_v10 }
  0x19   :  { %v81_v21 = vadd.f32 %v80_v18, %v66_v13 }
  0x1b   :  { %v82_v24 = vadd.f32 %v81_v21, %v67_v17 }
  0x1d   :  { %v83_v27 = vadd.f32 %v82_v24, %v68_v20 }
  0x1f   :  { %v84_v30 = vadd.f32 %v83_v27, %v69_v23 }
  0x21   :  { %v85_v33 = vadd.f32 %v84_v30, %v70_v26 }
  0x23   :  { %v86_v36 = vadd.f32 %v85_v33, %v71_v29 }
  0x25   :  { %v87_v39 = vadd.f32 %v86_v36, %v72_v32  ;;  %v45_v36 = vld [vmem:[%s599_s0 + $0x8] sm:$0xff]  ;;  %s477_s0 = smov [#allocation8]  }
  0x26   :  { %s321_s26 = sshll.u32 %s477_s0, 4  ;;  %s322_s26 = int_to_ptr.vmem [resolvable:$true] %s321_s26 }
  0x27   :  { %v88_v42 = vadd.f32 %v87_v39, %v73_v35  ;;  %s424_s30 = scalar_lea.vmem %s322_s26, 16  ;;  %s428_s5 = scalar_lea.vmem %s322_s26, 32 }
  0x28   :  { %p425_p5 = scmp.ne.s32.totalorder %s322_s26, %s424_s30  ;;  %p429_p6 = scmp.lt.s32.totalorder %s322_s26, %s322_s26 }
  0x29   :  { %v89_v45 = vadd.f32 %v88_v42, %v74_v38  ;;  %p430_p7 = scmp.lt.s32.totalorder %s428_s5, %s424_s30 }
  0x2b   :  { %v90_v47 = vadd.f32 %v89_v45, %v75_v41  ;;  %p431_p8 = por %p430_p7, %p429_p6 }
  0x2d   :  { %v91_v48 = vadd.f32 %v90_v47, %v76_v44  ;;  %p432_p9 = pnand %p431_p8, %p425_p5 }
  0x2f   :  { %v92_v49 = vadd.f32 %v91_v48, %v77_v46 }
  0x31   :  { %v93_v50 = vrot.slane %v92_v49, 4 }
  0x33   :  { %v94_v51 = vadd.f32 %v93_v50, %v92_v49 }
  0x35   :  { %v95_v52 = vrot.slane %v94_v51, 2 }
  0x37   :  { %v96_v53 = vadd.f32 %v95_v52, %v94_v51  ;;  %v196_v51 = vld [vmem:[#allocation4] sm:$0xff] }
  0x39   :  { %v97_v54 = vrot.slane %v96_v53, 1 }
  0x3b   :  { %v98_v55 = vadd.f32 %v97_v54, %v96_v53 }
  0x3d   :  { %v99_v56 = vmax.f32 %v98_v55, 1e-12 }
  0x3f   :  { %392 = vrsqrt.f32 %v99_v56  ;;  %v223_v56 = vld [vmem:[#allocation3] sm:$0xff] }
  0x4c   :  { %v393_v57 = vpop.eup %392 }
  0x4d   :  { %v115_v58 = vmul.f32 %v393_v57, %v60_v40  ;;  %v116_v59 = vmul.f32 %v393_v57, %v61_v43  ;;  %v113_v60 = vmul.f32 %v393_v57, %v58_v34  ;;  %v114_v61 = vmul.f32 %v393_v57, %v59_v37 }
  0x4e   :  { %v107_v63 = vmul.f32 %v393_v57, %v52_v15  ;;  %v108_v1 = vmul.f32 %v393_v57, %v53_v19  ;;  %v111_v6 = vmul.f32 %v393_v57, %v56_v28  ;;  %v112_v7 = vmul.f32 %v393_v57, %v57_v31  ;;  %v391_v19 = vld [vmem:[%s600_s1] sm:$0xff]  }
  0x4f   :  { %v124_v62 = vpack.c.bf16 %v116_v59, %v115_v58  ;;  %v105_v8 = vmul.f32 %v393_v57, %v50_v9  ;;  %v106_v10 = vmul.f32 %v393_v57, %v51_v12  ;;  %v123_v11 = vpack.c.bf16 %v114_v61, %v113_v60 }
  0x50   :  { %v120_v13 = vpack.c.bf16 %v108_v1, %v107_v63  ;;  %v103_v14 = vmul.f32 %v393_v57, %v513_v4  ;;  %v104_v16 = vmul.f32 %v393_v57, %v515_v5  ;;  %v122_v20 = vpack.c.bf16 %v112_v7, %v111_v6 }
  0x51   :  { %357 = vmatpush3.bf16.msra.mxu0 %v124_v62  ;;  %v119_v17 = vpack.c.bf16 %v106_v10, %v105_v8  ;;  %v109_v21 = vmul.f32 %v393_v57, %v54_v22  ;;  %v110_v15 = vmul.f32 %v393_v57, %v55_v25  ;;  %v101_v4 = vmul.f32 %v393_v57, %v509_v2 }
  0x52   :  { %358 = vmatprep.subr.bf16.mxu0 %v473_v0  ;;  %v118_v18 = vpack.c.bf16 %v104_v16, %v103_v14  ;;  %v102_v5 = vmul.f32 %v393_v57, %v511_v3  ;;  %v476_v22 = vmov -1e+30   ;;  %v175_v2 = vlaneseq }
  0x53   :  { %v121_v9 = vpack.c.bf16 %v110_v15, %v109_v21  ;;  %38 = vst.msk [vmem:[#allocation2] sm:$0xff] %vm37_vm1, %v476_v22  ;;  %39 = vst.msk [vmem:[#allocation2 + $0x8] sm:$0xff] %vm37_vm1, %v476_v22 }
  0x54   :  { %v117_v12 = vpack.c.bf16 %v102_v5, %v101_v4  ;;  %v552_v3 = vand.u32 127, %v175_v2 }
  0x55   :  { %359 = vmatpush3.bf16.msra.mxu0 %v123_v11 }
  0x56   :  { %360 = vmatprep.subr.bf16.mxu0 %v473_v0  ;;  %vm193_vm3 = vcmp.lt.s32.totalorder %v552_v3, 16 }
  0x59   :  { %361 = vmatpush3.bf16.msra.mxu0 %v122_v20 }
  0x5a   :  { %362 = vmatprep.subr.bf16.mxu0 %v473_v0  ;;  %v213_v32 = vld [vmem:[#allocation2] sm:$0xff]  ;;  %v571_v48 = vld [vmem:[#allocation2 + $0x8] sm:$0xff] }
  0x5d   :  { %363 = vmatpush3.bf16.msra.mxu0 %v121_v9 }
  0x5e   :  { %364 = vmatprep.subr.bf16.mxu0 %v473_v0 }
  0x61   :  { %365 = vmatpush3.bf16.msra.mxu0 %v120_v13 }
  0x62   :  { %366 = vmatprep.subr.bf16.mxu0 %v473_v0 }
  0x65   :  { %367 = vmatpush3.bf16.msra.mxu0 %v119_v17 }
  0x66   :  { %368 = vmatprep.subr.bf16.mxu0 %v473_v0 }
  0x69   :  { %369 = vmatpush3.bf16.msra.mxu0 %v118_v18 }
  0x6a   :  { %370 = vmatprep.subr.bf16.mxu0 %v473_v0 }
  0x6d   :  { %371 = vmatpush3.bf16.msra.mxu0 %v117_v12 }
  0x70   :  { %373 = vmatmul.mubr.bf16.vlgmr.msra.gmra.mxu0 %v391_v19 }
  0x8e   :  { %v181_v23 = vpop.permute.xlu0 %180 }
  0x8f   :  { %vm185_vm2 = vcmp.eq.s32.totalorder %v552_v3, %v181_v23 }
 0x130   :  { %v167_v24 = vpop.f32.mrf.mxu0 }
 0x131   :  { %v187_v25 = vmul.f32 64.0, %v167_v24 }
 0x132   :  { %v374_v26 = vpop.f32.mrf.mxu0 }
 0x133   :  { %v345_v27 = vadd.f32 -22.4, %v187_v25 }
 0x134   :  { %v170_v28 = vpop.f32.mrf.mxu0 }
 0x135   :  { %v191_v29 = vsel %vm185_vm2, %v345_v27, %v187_v25  ;;  %v188_v37 = vmul.f32 64.0, %v170_v28 }
 0x136   :  { %v375_v30 = vpop.f32.mrf.mxu0  ;;  %v194_v31 = vsel %vm193_vm3, %v191_v29, -1e+30 }
 0x137   :  { %209 = vmax.xlane.f32.xlu0 %v194_v31  ;;  %v346_v41 = vadd.f32 -22.4, %v188_v37  ;;  %v198_v45 = vsel %vm185_vm2, %v194_v31, 0.0 }
 0x1c0   :  { %v210_v33 = vpop.xlane.xlu0 %209 }
 0x1c1   :  { %v215_v34 = vmax.f32 %v213_v32, %v210_v33 }
 0x1c3   :  { %v217_v35 = vsub.f32 %v213_v32, %v215_v34  ;;  %251 = vst.msk [vmem:[#allocation2] sm:$0xff] %vm37_vm1, %v215_v34  ;;  %229 = vperm.xlu1 %390, %v215_v34  }
 0x1c5   :  { %v219_v47 = vmul.f32 1.442695, %v217_v35 }
 0x1c7   :  { %183 = vperm.xlu1 %390, %v45_v36  }
 0x1ca   :  { %v265_v63 = vld [vmem:[#allocation2] sm:$0xff] }
 0x23e   :  { %v230_v38 = vpop.permute.xlu1 %229 }
 0x23f   :  { %v237_v39 = vsub.f32 %v194_v31, %v230_v38 }
 0x241   :  { %v239_v40 = vmul.f32 1.442695, %v237_v39 }
 0x242   :  { %v184_v42 = vpop.permute.xlu1 %183 }
 0x243   :  { %394 = vpow2.f32 %v239_v40  ;;  %vm186_vm4 = vcmp.eq.s32.totalorder %v552_v3, %v184_v42 }
 0x244   :  { %v192_v43 = vsel %vm186_vm4, %v346_v41, %v188_v37  ;;  %396 = vpow2.f32 %v219_v47 }
 0x245   :  { %v195_v44 = vsel %vm193_vm3, %v192_v43, -1e+30 }
 0x246   :  { %211 = vmax.xlane.f32.xlu0 %v195_v44  ;;  %v199_v13 = vsel %vm186_vm4, %v195_v44, 0.0 }
 0x24a   :  { %200 = vadd.xlane.f32.xlu0 %v198_v45 }
 0x250   :  { %v395_v46 = vpop.eup %394 }
 0x251   :  { %243 = vadd.xlane.f32.xlu1 %v395_v46  ;;  %v397_v55 = vpop.eup %396 }
 0x252   :  { %v225_v57 = vmul.f32 %v397_v55, %v223_v56 }
 0x2cf   :  { %v212_v49 = vpop.xlane.xlu0 %211 }
 0x2d0   :  { %v574_v50 = vmax.f32 %v571_v48, %v212_v49 }
 0x2d2   :  { %v218_v52 = vsub.f32 %v571_v48, %v574_v50  ;;  %252 = vst.msk [vmem:[#allocation2 + $0x8] sm:$0xff] %vm37_vm1, %v574_v50  ;;  %234 = vperm.xlu0 %389, %v574_v50  }
 0x2d3   :  { %v201_v53 = vpop.xlane.xlu0 %200 }
 0x2d4   :  { %v204_v54 = vadd.f32 %v201_v53, %v196_v51 }
 0x2d6   :  { %207 = vst.msk [vmem:[#allocation4] sm:$0xff] %vm37_vm1, %v204_v54 }
 0x2da   :  { %v244_v58 = vpop.xlane.xlu1 %243 }
 0x2db   :  { %v247_v59 = vadd.f32 %v244_v58, %v225_v57 }
 0x2dd   :  { %249 = vst.msk [vmem:[#allocation3] sm:$0xff] %vm37_vm1, %v247_v59  ;;  %v275_v1 = vld [vmem:[#allocation4] sm:$0xff] }
 0x2de   :  { %vm281_vm5 = vcmp.ge.f32.partialorder %v275_v1, %v265_v63 }
 0x2df   :  { %v285_v10 = vsel %vm281_vm5, 1.0, %v473_v0  ;;  %v197_v0 = vld [vmem:[#allocation4 + $0x8] sm:$0xff] }
 0x2e0   :  { %v301_v11 = vsel %vm37_vm1, %v285_v10, 0.0 }
 0x2e4   :  { %v267_v60 = vld [vmem:[#allocation3] sm:$0xff] }
 0x2e5   :  { %398 = vlog2.f32 %v267_v60 }
 0x2f2   :  { %v399_v61 = vpop.eup %398 }
 0x2f3   :  { %v270_v62 = vmul.f32 0.6931472, %v399_v61 }
 0x2f5   :  { %v273_v6 = vadd.f32 %v270_v62, %v265_v63 }
 0x2f7   :  { %v277_v7 = vsub.f32 %v273_v6, %v275_v1 }
 0x2f9   :  { %v287_v8 = vsel %vm37_vm1, %v277_v7, 0.0 }
 0x2fa   :  { %290 = vadd.xlane.f32.xlu1 %v287_v8 }
 0x2fe   :  { %304 = vadd.xlane.f32.xlu1 %v301_v11 }
 0x302   :  { %202 = vadd.xlane.f32.xlu1 %v199_v13 }
 0x34d   :  { %v235_v14 = vpop.permute.xlu0 %234 }
 0x34e   :  { %v238_v16 = vsub.f32 %v195_v44, %v235_v14 }
 0x350   :  { %v241_v17 = vmul.f32 1.442695, %v238_v16 }
 0x352   :  { %400 = vpow2.f32 %v241_v17 }
 0x35f   :  { %v401_v18 = vpop.eup %400 }
 0x360   :  { %245 = vadd.xlane.f32.xlu1 %v401_v18 }
 0x383   :  { %v291_v20 = vpop.xlane.xlu1 %290 }
 0x384   :  { %v292_v21 = vrot.slane %v291_v20, 4 }
 0x386   :  { %v293_v15 = vadd.f32 %v292_v21, %v291_v20 }
 0x387   :  { %v305_v9 = vpop.xlane.xlu1 %304 }
 0x388   :  { %v294_v4 = vrot.slane %v293_v15, 2  ;;  %v306_v5 = vrot.slane %v305_v9, 4 }
 0x38a   :  { %v307_v12 = vadd.f32 %v306_v5, %v305_v9  ;;  %v295_v19 = vadd.f32 %v294_v4, %v293_v15 }
 0x38b   :  { %v203_v22 = vpop.xlane.xlu1 %202 }
 0x38c   :  { %v308_v2 = vrot.slane %v307_v12, 2  ;;  %v205_v3 = vadd.f32 %v203_v22, %v197_v0  ;;  %v296_v23 = vrot.slane %v295_v19, 1 }
 0x38e   :  { %208 = vst.msk [vmem:[#allocation4 + $0x8] sm:$0xff] %vm37_vm1, %v205_v3  ;;  %v297_v24 = vadd.f32 %v296_v23, %v295_v19  ;;  %v309_v25 = vadd.f32 %v308_v2, %v307_v12 }
 0x390   :  { %376 = vpush %v297_v24  ;;  %v310_v26 = vrot.slane %v309_v25, 1 }
 0x392   :  { %v311_v27 = vadd.f32 %v310_v26, %v309_v25 }
 0x394   :  { %378 = vpush %v311_v27 }
 0x3c1   :  { %s377_s27 = spop %376 }
 0x3c2   :  { %v299_v28 = vstv %s377_s27 }
 0x3c3   :  { %300 = vst [vmem:[#allocation8] sm:$0x1] %v299_v28 }
 0x3c4   :  { %435 = shalt.err (!%p432_p9)
}
 0x3c5   :  { %324 = dma.vmem_to_hbm [thread:$0]  %s322_s26, 16, %s602_s3, [#allocation7]  }
 0x3c6   :  { %s379_s8 = spop %378  ;;  %s444_s9 = scalar_lea.vmem %s332_s29, 16 }
 0x3c7   :  { %v313_v29 = vstv %s379_s8  ;;  %p445_p10 = scmp.ne.s32.totalorder %s332_s29, %s444_s9  ;;  %s448_s10 = scalar_lea.vmem %s332_s29, 32 }
 0x3c8   :  { %314 = vst [vmem:[#allocation9] sm:$0x1] %v313_v29  ;;  %p449_p11 = scmp.lt.s32.totalorder %s332_s29, %s332_s29  ;;  %p450_p12 = scmp.lt.s32.totalorder %s448_s10, %s444_s9 }
 0x3ca   :  { %p451_p13 = por %p450_p12, %p449_p11 }
 0x3cc   :  { %p452_p0 = pnand %p451_p13, %p445_p10 }
 0x3ce   :  { %455 = shalt.err (!%p452_p0)
}
 0x3cf   :  { %334 = dma.vmem_to_hbm [thread:$0]  %s332_s29, 16, %s603_s4, [#allocation10]   ;;  %v221_v30 = vmul.f32 1.442695, %v218_v52  ;;  %v224_v32 = vld [vmem:[#allocation3 + $0x8] sm:$0xff] }
 0x3d1   :  { %402 = vpow2.f32 %v221_v30 }
 0x3de   :  { %v403_v31 = vpop.eup %402 }
 0x3df   :  { %v226_v33 = vmul.f32 %v403_v31, %v224_v32 }
 0x3e9   :  { %v246_v34 = vpop.xlane.xlu1 %245 }
 0x3ea   :  { %v248_v35 = vadd.f32 %v246_v34, %v226_v33 }
 0x3ec   :  { %250 = vst.msk [vmem:[#allocation3 + $0x8] sm:$0xff] %vm37_vm1, %v248_v35 }
 0x3ed   :  { %466 = dma.done.wait [#allocation7], 16  }
 0x3ee   :  { %467 = vsyncadd [#allocation7], 4294967280 }
 0x3ef   :  { %468 = dma.done.wait [#allocation10], 16  }
 0x3f0   :  { %469 = vsyncadd [#allocation10], 4294967280 }
 0x3f1   :  { %341 = vsyncpa [#allocation6], 1 }
 0x3f2   :  { %342 = vsyncpa [#allocation7], 1 }
 0x3f3   :  { %343 = vsyncpa [#allocation10], 1 }

</bundles_post_ra>
